<compile_context>
chip_gen: v5e
topology: v5e:2x2
jax: 0.10.0
libtpu: 0.0.40
codegen_flags: <defaults>
</compile_context>

<pallas_src>
import functools

import jax
import jax.numpy as jnp
from jax import lax
from jax.experimental import pallas as pl
from jax.experimental.pallas import tpu as pltpu


def _round_up(x, m):
    return ((x + m - 1) // m) * m


def _lstm_fc_kernel(x_ref,      # (T*Bp, I)  f32, time-major, batch padded to Bp=8
                    wih_ref,    # (I, 4H)    bf16 fused input->hidden, gate order (i,f,o,g), i/f/o cols pre-scaled by 0.5
                    whh_ref,    # (H, 4H)    bf16 fused hidden->hidden, same packing
                    b_ref,      # (1, 4H)    f32 combined bias (b_ih + b_hh), i/f/o entries pre-scaled by 0.5
                    wfc_ref,    # (H, Op)    bf16 fc weight (transposed, lane-padded to Op)
                    bfc_ref,    # (1, Op)    f32 fc bias (lane-padded)
                    out_ref):   # (Bp, Op)   f32
    Bp = out_ref.shape[0]
    TB = x_ref.shape[0]
    T = TB // Bp
    H = whh_ref.shape[0]
    H4 = 4 * H

    # Hoisted input projection: one lane-dense bf16 MXU matmul for all timesteps.
    xp = (jnp.dot(x_ref[...].astype(jnp.bfloat16), wih_ref[...],
                  preferred_element_type=jnp.float32)
          + b_ref[...])                                      # (T*Bp, 4H) f32

    # Loop-invariant recurrent weight, loaded once.
    whh = whh_ref[...]                                       # (H, 4H) bf16

    # Lane constants: sigmoid lanes (i,f,o -> first 3H) get 0.5*tanh+0.5,
    # tanh lanes (g) pass through.  Hoisted; the per-step fixup is a single
    # full-vreg VPU mul/add with no lane masking.
    lane = lax.broadcasted_iota(jnp.int32, (1, H4), 1)
    gate_scale = jnp.where(lane < 3 * H, 0.5, 1.0).astype(jnp.float32)
    gate_shift = jnp.where(lane < 3 * H, 0.5, 0.0).astype(jnp.float32)

    # h / c carried in vregs across the unrolled recurrence (f32 state).
    h = jnp.zeros((Bp, H), jnp.float32)
    c = jnp.zeros((Bp, H), jnp.float32)

    for t in range(T):                                       # T static -> fully unrolled
        pre = (xp[t * Bp:(t + 1) * Bp, :]                    # sublane-aligned (Bp=8) slab
               + jnp.dot(h.astype(jnp.bfloat16), whh,
                         preferred_element_type=jnp.float32))   # (Bp, 4H)
        act = jnp.tanh(pre) * gate_scale + gate_shift        # ONE EUP push for all 4 gates
        i_g = act[:, :H]
        f_g = act[:, H:2 * H]
        o_g = act[:, 2 * H:3 * H]
        g_g = act[:, 3 * H:]
        c = f_g * c + i_g * g_g
        h = o_g * jnp.tanh(c)

    # concat_hidden (single layer/direction -> identity), ReLU, fc.
    h_relu = jnp.maximum(h, 0.0)
    out_ref[...] = (jnp.dot(h_relu.astype(jnp.bfloat16), wfc_ref[...],
                            preferred_element_type=jnp.float32)
                    + bfc_ref[...])                          # lane-dense (Bp, Op) store


@functools.partial(jax.jit, static_argnames=("output_size",))
def simple_rnn_forward(input_sequences, packed, output_size):
    """input_sequences: (B, T, I) float32 (batch_first). Returns (B, output_size)."""
    B, T, I = input_sequences.shape
    Op = packed["w_fc"].shape[1]

    # Pad batch to the f32 sublane count so every per-step slab is vreg-aligned,
    # then go time-major so the kernel uses only 2-D matmuls + static row slices.
    Bp = _round_up(max(B, 8), 8)
    x_p = jnp.pad(input_sequences, ((0, Bp - B), (0, 0), (0, 0)))
    x_tm = jnp.transpose(x_p, (1, 0, 2)).reshape(T * Bp, I)

    vmem = pl.BlockSpec(memory_space=pltpu.MemorySpace.VMEM)
    out = pl.pallas_call(
        _lstm_fc_kernel,
        out_shape=jax.ShapeDtypeStruct((Bp, Op), jnp.float32),
        in_specs=[vmem] * 6,
        out_specs=vmem,
    )(x_tm,
      packed["w_ih"], packed["w_hh"], packed["b_gates"],
      packed["w_fc"], packed["b_fc"])
    return out[:B, :output_size]


def init_raw_params(key, input_size, hidden_size, output_size):
    """PyTorch-shaped parameters: weight_ih (4H, I), weight_hh (4H, H),
    bias_ih/bias_hh (4H,) in gate order (i, f, g, o); fc weight (O, H), bias (O,)."""
    I, H, O = input_size, hidden_size, output_size
    k = 1.0 / jnp.sqrt(jnp.float32(H))
    ks = jax.random.split(key, 6)
    return {
        "w_ih": jax.random.uniform(ks[0], (4 * H, I), jnp.float32, -k, k),
        "w_hh": jax.random.uniform(ks[1], (4 * H, H), jnp.float32, -k, k),
        "b_ih": jax.random.uniform(ks[2], (4 * H,), jnp.float32, -k, k),
        "b_hh": jax.random.uniform(ks[3], (4 * H,), jnp.float32, -k, k),
        "w_fc": jax.random.uniform(ks[4], (O, H), jnp.float32, -k, k),
        "b_fc": jax.random.uniform(ks[5], (O,), jnp.float32, -k, k),
    }


def pack_params(raw, hidden_size, lane_pad=128):
    """Repack PyTorch layout into the kernel layout:
      * fused (·, 4H) weights / (1, 4H) bias, gate order (i, f, o, g);
      * i/f/o gate weights+bias pre-scaled by 0.5 (sigmoid-as-tanh trick);
      * MXU operand weights cast to bf16 (bias stays f32);
      * fc weight/bias lane-padded to a multiple of 128 for a dense store."""
    H = hidden_size
    order = jnp.array([0, 1, 3, 2])            # PyTorch (i,f,g,o) -> kernel (i,f,o,g)
    gate_scale = jnp.array([0.5, 0.5, 0.5, 1.0], jnp.float32)   # kernel gate order

    def pack_w(w):                             # (4H, X) -> (X, 4H) bf16
        w4 = w.reshape(4, H, w.shape[1])[order] * gate_scale[:, None, None]
        return (jnp.transpose(w4, (2, 0, 1))
                .reshape(w.shape[1], 4 * H).astype(jnp.bfloat16))

    b = ((raw["b_ih"] + raw["b_hh"]).reshape(4, H)[order]
         * gate_scale[:, None]).reshape(1, 4 * H).astype(jnp.float32)

    O = raw["w_fc"].shape[0]
    Op = _round_up(O, lane_pad)
    w_fc = jnp.zeros((H, Op), jnp.float32).at[:, :O].set(raw["w_fc"].T)
    b_fc = jnp.zeros((1, Op), jnp.float32).at[:, :O].set(raw["b_fc"])

    return {
        "w_ih": pack_w(raw["w_ih"]),            # (I, 4H) bf16
        "w_hh": pack_w(raw["w_hh"]),            # (H, 4H) bf16
        "b_gates": b,                           # (1, 4H) f32
        "w_fc": w_fc.astype(jnp.bfloat16),      # (H, Op) bf16
        "b_fc": b_fc,                           # (1, Op) f32
    }


def reference_forward(x, raw):
    """Pure-JAX f32 reference of the PyTorch forward (raw PyTorch-layout params)."""
    B, T, I = x.shape
    H = raw["w_hh"].shape[1]
    wih_t = raw["w_ih"].T              # (I, 4H), gate order i,f,g,o
    whh_t = raw["w_hh"].T              # (H, 4H)
    b = raw["b_ih"] + raw["b_hh"]      # (4H,)

    def step(carry, xt):
        h, c = carry
        z = xt @ wih_t + h @ whh_t + b
        i_g = jax.nn.sigmoid(z[:, :H])
        f_g = jax.nn.sigmoid(z[:, H:2 * H])
        g_g = jnp.tanh(z[:, 2 * H:3 * H])
        o_g = jax.nn.sigmoid(z[:, 3 * H:])
        c_n = f_g * c + i_g * g_g
        h_n = o_g * jnp.tanh(c_n)
        return (h_n, c_n), None

    h0 = jnp.zeros((B, H), jnp.float32)
    c0 = jnp.zeros((B, H), jnp.float32)
    (h_fin, _), _ = lax.scan(step, (h0, c0), jnp.transpose(x, (1, 0, 2)))
    return jnp.maximum(h_fin, 0.0) @ raw["w_fc"].T + raw["b_fc"]


if __name__ == "__main__":
    # input_sequences: (batch=2, seq=8, input_size=16); hidden=32 (4H=128); output=8.
    B, T, I, H, O = 2, 8, 16, 32, 8

    key = jax.random.PRNGKey(0)
    k_x, k_p = jax.random.split(key)
    x = jax.random.normal(k_x, (B, T, I), jnp.float32)
    raw = init_raw_params(k_p, I, H, O)
    packed = pack_params(raw, H)

    out = simple_rnn_forward(x, packed, output_size=O)
    out = jax.block_until_ready(out)

    ref = reference_forward(x, raw)
    assert out.shape == (B, O)
    # bf16 MXU operands vs. the f32 reference -> loosened tolerance (review note).
    assert jnp.allclose(out, ref, atol=5e-2, rtol=5e-2), (
        f"max abs diff {jnp.max(jnp.abs(out - ref))}")

    print("KERNEL_OK")
</pallas_src>

<mosaic_0001>
module attributes {stable_mosaic.version = 11 : i64} {
  func.func @_lstm_fc_kernel(%arg0: memref<64x16xf32, #tpu.memory_space<vmem>>, %arg1: memref<16x128xbf16, #tpu.memory_space<vmem>>, %arg2: memref<32x128xbf16, #tpu.memory_space<vmem>>, %arg3: memref<1x128xf32, #tpu.memory_space<vmem>>, %arg4: memref<32x128xbf16, #tpu.memory_space<vmem>>, %arg5: memref<1x128xf32, #tpu.memory_space<vmem>>, %arg6: memref<8x128xf32, #tpu.memory_space<vmem>>) attributes {dimension_semantics = [], scalar_prefetch = 0 : i64, scratch_operands = 0 : i64, tpu.core_type = #tpu.core_type<tc>} {
    %c0 = arith.constant 0 : index
    %c0_0 = arith.constant 0 : index
    %0 = vector.load %arg0[%c0, %c0_0] : memref<64x16xf32, #tpu.memory_space<vmem>>, vector<64x16xf32>
    %1 = arith.truncf %0 : vector<64x16xf32> to vector<64x16xbf16>
    %c0_1 = arith.constant 0 : index
    %c0_2 = arith.constant 0 : index
    %2 = vector.load %arg1[%c0_1, %c0_2] : memref<16x128xbf16, #tpu.memory_space<vmem>>, vector<16x128xbf16>
    %cst = arith.constant dense<0.000000e+00> : vector<64x128xf32>
    %3 = tpu.matmul %1, %2, %cst {dimension_numbers = #tpu.dot_dimension_numbers<[1], [0], [0], [1], [0, 0, 1, 1], [], []>} : vector<64x16xbf16>, vector<16x128xbf16>, vector<64x128xf32> -> vector<64x128xf32>
    %c0_3 = arith.constant 0 : index
    %c0_4 = arith.constant 0 : index
    %4 = vector.load %arg3[%c0_3, %c0_4] : memref<1x128xf32, #tpu.memory_space<vmem>>, vector<1x128xf32>
    %5 = vector.broadcast %4 : vector<1x128xf32> to vector<64x128xf32>
    %6 = arith.addf %3, %5 : vector<64x128xf32>
    %c0_5 = arith.constant 0 : index
    %c0_6 = arith.constant 0 : index
    %7 = vector.load %arg2[%c0_5, %c0_6] : memref<32x128xbf16, #tpu.memory_space<vmem>>, vector<32x128xbf16>
    %8 = tpu.iota {dimensions = array<i32: 1>} : vector<1x128xi32>
    %c96_i32 = arith.constant 96 : i32
    %9 = vector.broadcast %c96_i32 : i32 to vector<1x128xi32>
    %10 = arith.cmpi slt, %8, %9 : vector<1x128xi32>
    %cst_7 = arith.constant 5.000000e-01 : f32
    %cst_8 = arith.constant 1.000000e+00 : f32
    %11 = vector.broadcast %cst_7 : f32 to vector<1x128xf32>
    %12 = vector.broadcast %cst_8 : f32 to vector<1x128xf32>
    %13 = arith.select %10, %11, %12 : vector<1x128xi1>, vector<1x128xf32>
    %c96_i32_9 = arith.constant 96 : i32
    %14 = vector.broadcast %c96_i32_9 : i32 to vector<1x128xi32>
    %15 = arith.cmpi slt, %8, %14 : vector<1x128xi32>
    %cst_10 = arith.constant 5.000000e-01 : f32
    %cst_11 = arith.constant 0.000000e+00 : f32
    %16 = vector.broadcast %cst_10 : f32 to vector<1x128xf32>
    %17 = vector.broadcast %cst_11 : f32 to vector<1x128xf32>
    %18 = arith.select %15, %16, %17 : vector<1x128xi1>, vector<1x128xf32>
    %cst_12 = arith.constant 0.000000e+00 : f32
    %19 = vector.broadcast %cst_12 : f32 to vector<8x32xf32>
    %cst_13 = arith.constant 0.000000e+00 : f32
    %20 = vector.broadcast %cst_13 : f32 to vector<8x32xf32>
    %21 = vector.extract_strided_slice %6 {offsets = [0, 0], sizes = [8, 128], strides = [1, 1]} : vector<64x128xf32> to vector<8x128xf32>
    %22 = arith.truncf %19 : vector<8x32xf32> to vector<8x32xbf16>
    %cst_14 = arith.constant dense<0.000000e+00> : vector<8x128xf32>
    %23 = tpu.matmul %22, %7, %cst_14 {dimension_numbers = #tpu.dot_dimension_numbers<[1], [0], [0], [1], [0, 0, 1, 1], [], []>} : vector<8x32xbf16>, vector<32x128xbf16>, vector<8x128xf32> -> vector<8x128xf32>
    %24 = arith.addf %21, %23 : vector<8x128xf32>
    %25 = math.tanh %24 : vector<8x128xf32>
    %26 = vector.broadcast %13 : vector<1x128xf32> to vector<8x128xf32>
    %27 = arith.mulf %25, %26 : vector<8x128xf32>
    %28 = vector.broadcast %18 : vector<1x128xf32> to vector<8x128xf32>
    %29 = arith.addf %27, %28 : vector<8x128xf32>
    %30 = vector.extract_strided_slice %29 {offsets = [0, 0], sizes = [8, 32], strides = [1, 1]} : vector<8x128xf32> to vector<8x32xf32>
    %31 = vector.extract_strided_slice %29 {offsets = [0, 32], sizes = [8, 32], strides = [1, 1]} : vector<8x128xf32> to vector<8x32xf32>
    %32 = vector.extract_strided_slice %29 {offsets = [0, 64], sizes = [8, 32], strides = [1, 1]} : vector<8x128xf32> to vector<8x32xf32>
    %33 = vector.extract_strided_slice %29 {offsets = [0, 96], sizes = [8, 32], strides = [1, 1]} : vector<8x128xf32> to vector<8x32xf32>
    %34 = arith.mulf %31, %20 : vector<8x32xf32>
    %35 = arith.mulf %30, %33 : vector<8x32xf32>
    %36 = arith.addf %34, %35 : vector<8x32xf32>
    %37 = math.tanh %36 : vector<8x32xf32>
    %38 = arith.mulf %32, %37 : vector<8x32xf32>
    %39 = vector.extract_strided_slice %6 {offsets = [8, 0], sizes = [8, 128], strides = [1, 1]} : vector<64x128xf32> to vector<8x128xf32>
    %40 = arith.truncf %38 : vector<8x32xf32> to vector<8x32xbf16>
    %cst_15 = arith.constant dense<0.000000e+00> : vector<8x128xf32>
    %41 = tpu.matmul %40, %7, %cst_15 {dimension_numbers = #tpu.dot_dimension_numbers<[1], [0], [0], [1], [0, 0, 1, 1], [], []>} : vector<8x32xbf16>, vector<32x128xbf16>, vector<8x128xf32> -> vector<8x128xf32>
    %42 = arith.addf %39, %41 : vector<8x128xf32>
    %43 = math.tanh %42 : vector<8x128xf32>
    %44 = vector.broadcast %13 : vector<1x128xf32> to vector<8x128xf32>
    %45 = arith.mulf %43, %44 : vector<8x128xf32>
    %46 = vector.broadcast %18 : vector<1x128xf32> to vector<8x128xf32>
    %47 = arith.addf %45, %46 : vector<8x128xf32>
    %48 = vector.extract_strided_slice %47 {offsets = [0, 0], sizes = [8, 32], strides = [1, 1]} : vector<8x128xf32> to vector<8x32xf32>
    %49 = vector.extract_strided_slice %47 {offsets = [0, 32], sizes = [8, 32], strides = [1, 1]} : vector<8x128xf32> to vector<8x32xf32>
    %50 = vector.extract_strided_slice %47 {offsets = [0, 64], sizes = [8, 32], strides = [1, 1]} : vector<8x128xf32> to vector<8x32xf32>
    %51 = vector.extract_strided_slice %47 {offsets = [0, 96], sizes = [8, 32], strides = [1, 1]} : vector<8x128xf32> to vector<8x32xf32>
    %52 = arith.mulf %49, %36 : vector<8x32xf32>
    %53 = arith.mulf %48, %51 : vector<8x32xf32>
    %54 = arith.addf %52, %53 : vector<8x32xf32>
    %55 = math.tanh %54 : vector<8x32xf32>
    %56 = arith.mulf %50, %55 : vector<8x32xf32>
    %57 = vector.extract_strided_slice %6 {offsets = [16, 0], sizes = [8, 128], strides = [1, 1]} : vector<64x128xf32> to vector<8x128xf32>
    %58 = arith.truncf %56 : vector<8x32xf32> to vector<8x32xbf16>
    %cst_16 = arith.constant dense<0.000000e+00> : vector<8x128xf32>
    %59 = tpu.matmul %58, %7, %cst_16 {dimension_numbers = #tpu.dot_dimension_numbers<[1], [0], [0], [1], [0, 0, 1, 1], [], []>} : vector<8x32xbf16>, vector<32x128xbf16>, vector<8x128xf32> -> vector<8x128xf32>
    %60 = arith.addf %57, %59 : vector<8x128xf32>
    %61 = math.tanh %60 : vector<8x128xf32>
    %62 = vector.broadcast %13 : vector<1x128xf32> to vector<8x128xf32>
    %63 = arith.mulf %61, %62 : vector<8x128xf32>
    %64 = vector.broadcast %18 : vector<1x128xf32> to vector<8x128xf32>
    %65 = arith.addf %63, %64 : vector<8x128xf32>
    %66 = vector.extract_strided_slice %65 {offsets = [0, 0], sizes = [8, 32], strides = [1, 1]} : vector<8x128xf32> to vector<8x32xf32>
    %67 = vector.extract_strided_slice %65 {offsets = [0, 32], sizes = [8, 32], strides = [1, 1]} : vector<8x128xf32> to vector<8x32xf32>
    %68 = vector.extract_strided_slice %65 {offsets = [0, 64], sizes = [8, 32], strides = [1, 1]} : vector<8x128xf32> to vector<8x32xf32>
    %69 = vector.extract_strided_slice %65 {offsets = [0, 96], sizes = [8, 32], strides = [1, 1]} : vector<8x128xf32> to vector<8x32xf32>
    %70 = arith.mulf %67, %54 : vector<8x32xf32>
    %71 = arith.mulf %66, %69 : vector<8x32xf32>
    %72 = arith.addf %70, %71 : vector<8x32xf32>
    %73 = math.tanh %72 : vector<8x32xf32>
    %74 = arith.mulf %68, %73 : vector<8x32xf32>
    %75 = vector.extract_strided_slice %6 {offsets = [24, 0], sizes = [8, 128], strides = [1, 1]} : vector<64x128xf32> to vector<8x128xf32>
    %76 = arith.truncf %74 : vector<8x32xf32> to vector<8x32xbf16>
    %cst_17 = arith.constant dense<0.000000e+00> : vector<8x128xf32>
    %77 = tpu.matmul %76, %7, %cst_17 {dimension_numbers = #tpu.dot_dimension_numbers<[1], [0], [0], [1], [0, 0, 1, 1], [], []>} : vector<8x32xbf16>, vector<32x128xbf16>, vector<8x128xf32> -> vector<8x128xf32>
    %78 = arith.addf %75, %77 : vector<8x128xf32>
    %79 = math.tanh %78 : vector<8x128xf32>
    %80 = vector.broadcast %13 : vector<1x128xf32> to vector<8x128xf32>
    %81 = arith.mulf %79, %80 : vector<8x128xf32>
    %82 = vector.broadcast %18 : vector<1x128xf32> to vector<8x128xf32>
    %83 = arith.addf %81, %82 : vector<8x128xf32>
    %84 = vector.extract_strided_slice %83 {offsets = [0, 0], sizes = [8, 32], strides = [1, 1]} : vector<8x128xf32> to vector<8x32xf32>
    %85 = vector.extract_strided_slice %83 {offsets = [0, 32], sizes = [8, 32], strides = [1, 1]} : vector<8x128xf32> to vector<8x32xf32>
    %86 = vector.extract_strided_slice %83 {offsets = [0, 64], sizes = [8, 32], strides = [1, 1]} : vector<8x128xf32> to vector<8x32xf32>
    %87 = vector.extract_strided_slice %83 {offsets = [0, 96], sizes = [8, 32], strides = [1, 1]} : vector<8x128xf32> to vector<8x32xf32>
    %88 = arith.mulf %85, %72 : vector<8x32xf32>
    %89 = arith.mulf %84, %87 : vector<8x32xf32>
    %90 = arith.addf %88, %89 : vector<8x32xf32>
    %91 = math.tanh %90 : vector<8x32xf32>
    %92 = arith.mulf %86, %91 : vector<8x32xf32>
    %93 = vector.extract_strided_slice %6 {offsets = [32, 0], sizes = [8, 128], strides = [1, 1]} : vector<64x128xf32> to vector<8x128xf32>
    %94 = arith.truncf %92 : vector<8x32xf32> to vector<8x32xbf16>
    %cst_18 = arith.constant dense<0.000000e+00> : vector<8x128xf32>
    %95 = tpu.matmul %94, %7, %cst_18 {dimension_numbers = #tpu.dot_dimension_numbers<[1], [0], [0], [1], [0, 0, 1, 1], [], []>} : vector<8x32xbf16>, vector<32x128xbf16>, vector<8x128xf32> -> vector<8x128xf32>
    %96 = arith.addf %93, %95 : vector<8x128xf32>
    %97 = math.tanh %96 : vector<8x128xf32>
    %98 = vector.broadcast %13 : vector<1x128xf32> to vector<8x128xf32>
    %99 = arith.mulf %97, %98 : vector<8x128xf32>
    %100 = vector.broadcast %18 : vector<1x128xf32> to vector<8x128xf32>
    %101 = arith.addf %99, %100 : vector<8x128xf32>
    %102 = vector.extract_strided_slice %101 {offsets = [0, 0], sizes = [8, 32], strides = [1, 1]} : vector<8x128xf32> to vector<8x32xf32>
    %103 = vector.extract_strided_slice %101 {offsets = [0, 32], sizes = [8, 32], strides = [1, 1]} : vector<8x128xf32> to vector<8x32xf32>
    %104 = vector.extract_strided_slice %101 {offsets = [0, 64], sizes = [8, 32], strides = [1, 1]} : vector<8x128xf32> to vector<8x32xf32>
    %105 = vector.extract_strided_slice %101 {offsets = [0, 96], sizes = [8, 32], strides = [1, 1]} : vector<8x128xf32> to vector<8x32xf32>
    %106 = arith.mulf %103, %90 : vector<8x32xf32>
    %107 = arith.mulf %102, %105 : vector<8x32xf32>
    %108 = arith.addf %106, %107 : vector<8x32xf32>
    %109 = math.tanh %108 : vector<8x32xf32>
    %110 = arith.mulf %104, %109 : vector<8x32xf32>
    %111 = vector.extract_strided_slice %6 {offsets = [40, 0], sizes = [8, 128], strides = [1, 1]} : vector<64x128xf32> to vector<8x128xf32>
    %112 = arith.truncf %110 : vector<8x32xf32> to vector<8x32xbf16>
    %cst_19 = arith.constant dense<0.000000e+00> : vector<8x128xf32>
    %113 = tpu.matmul %112, %7, %cst_19 {dimension_numbers = #tpu.dot_dimension_numbers<[1], [0], [0], [1], [0, 0, 1, 1], [], []>} : vector<8x32xbf16>, vector<32x128xbf16>, vector<8x128xf32> -> vector<8x128xf32>
    %114 = arith.addf %111, %113 : vector<8x128xf32>
    %115 = math.tanh %114 : vector<8x128xf32>
    %116 = vector.broadcast %13 : vector<1x128xf32> to vector<8x128xf32>
    %117 = arith.mulf %115, %116 : vector<8x128xf32>
    %118 = vector.broadcast %18 : vector<1x128xf32> to vector<8x128xf32>
    %119 = arith.addf %117, %118 : vector<8x128xf32>
    %120 = vector.extract_strided_slice %119 {offsets = [0, 0], sizes = [8, 32], strides = [1, 1]} : vector<8x128xf32> to vector<8x32xf32>
    %121 = vector.extract_strided_slice %119 {offsets = [0, 32], sizes = [8, 32], strides = [1, 1]} : vector<8x128xf32> to vector<8x32xf32>
    %122 = vector.extract_strided_slice %119 {offsets = [0, 64], sizes = [8, 32], strides = [1, 1]} : vector<8x128xf32> to vector<8x32xf32>
    %123 = vector.extract_strided_slice %119 {offsets = [0, 96], sizes = [8, 32], strides = [1, 1]} : vector<8x128xf32> to vector<8x32xf32>
    %124 = arith.mulf %121, %108 : vector<8x32xf32>
    %125 = arith.mulf %120, %123 : vector<8x32xf32>
    %126 = arith.addf %124, %125 : vector<8x32xf32>
    %127 = math.tanh %126 : vector<8x32xf32>
    %128 = arith.mulf %122, %127 : vector<8x32xf32>
    %129 = vector.extract_strided_slice %6 {offsets = [48, 0], sizes = [8, 128], strides = [1, 1]} : vector<64x128xf32> to vector<8x128xf32>
    %130 = arith.truncf %128 : vector<8x32xf32> to vector<8x32xbf16>
    %cst_20 = arith.constant dense<0.000000e+00> : vector<8x128xf32>
    %131 = tpu.matmul %130, %7, %cst_20 {dimension_numbers = #tpu.dot_dimension_numbers<[1], [0], [0], [1], [0, 0, 1, 1], [], []>} : vector<8x32xbf16>, vector<32x128xbf16>, vector<8x128xf32> -> vector<8x128xf32>
    %132 = arith.addf %129, %131 : vector<8x128xf32>
    %133 = math.tanh %132 : vector<8x128xf32>
    %134 = vector.broadcast %13 : vector<1x128xf32> to vector<8x128xf32>
    %135 = arith.mulf %133, %134 : vector<8x128xf32>
    %136 = vector.broadcast %18 : vector<1x128xf32> to vector<8x128xf32>
    %137 = arith.addf %135, %136 : vector<8x128xf32>
    %138 = vector.extract_strided_slice %137 {offsets = [0, 0], sizes = [8, 32], strides = [1, 1]} : vector<8x128xf32> to vector<8x32xf32>
    %139 = vector.extract_strided_slice %137 {offsets = [0, 32], sizes = [8, 32], strides = [1, 1]} : vector<8x128xf32> to vector<8x32xf32>
    %140 = vector.extract_strided_slice %137 {offsets = [0, 64], sizes = [8, 32], strides = [1, 1]} : vector<8x128xf32> to vector<8x32xf32>
    %141 = vector.extract_strided_slice %137 {offsets = [0, 96], sizes = [8, 32], strides = [1, 1]} : vector<8x128xf32> to vector<8x32xf32>
    %142 = arith.mulf %139, %126 : vector<8x32xf32>
    %143 = arith.mulf %138, %141 : vector<8x32xf32>
    %144 = arith.addf %142, %143 : vector<8x32xf32>
    %145 = math.tanh %144 : vector<8x32xf32>
    %146 = arith.mulf %140, %145 : vector<8x32xf32>
    %147 = vector.extract_strided_slice %6 {offsets = [56, 0], sizes = [8, 128], strides = [1, 1]} : vector<64x128xf32> to vector<8x128xf32>
    %148 = arith.truncf %146 : vector<8x32xf32> to vector<8x32xbf16>
    %cst_21 = arith.constant dense<0.000000e+00> : vector<8x128xf32>
    %149 = tpu.matmul %148, %7, %cst_21 {dimension_numbers = #tpu.dot_dimension_numbers<[1], [0], [0], [1], [0, 0, 1, 1], [], []>} : vector<8x32xbf16>, vector<32x128xbf16>, vector<8x128xf32> -> vector<8x128xf32>
    %150 = arith.addf %147, %149 : vector<8x128xf32>
    %151 = math.tanh %150 : vector<8x128xf32>
    %152 = vector.broadcast %13 : vector<1x128xf32> to vector<8x128xf32>
    %153 = arith.mulf %151, %152 : vector<8x128xf32>
    %154 = vector.broadcast %18 : vector<1x128xf32> to vector<8x128xf32>
    %155 = arith.addf %153, %154 : vector<8x128xf32>
    %156 = vector.extract_strided_slice %155 {offsets = [0, 0], sizes = [8, 32], strides = [1, 1]} : vector<8x128xf32> to vector<8x32xf32>
    %157 = vector.extract_strided_slice %155 {offsets = [0, 32], sizes = [8, 32], strides = [1, 1]} : vector<8x128xf32> to vector<8x32xf32>
    %158 = vector.extract_strided_slice %155 {offsets = [0, 64], sizes = [8, 32], strides = [1, 1]} : vector<8x128xf32> to vector<8x32xf32>
    %159 = vector.extract_strided_slice %155 {offsets = [0, 96], sizes = [8, 32], strides = [1, 1]} : vector<8x128xf32> to vector<8x32xf32>
    %160 = arith.mulf %157, %144 : vector<8x32xf32>
    %161 = arith.mulf %156, %159 : vector<8x32xf32>
    %162 = arith.addf %160, %161 : vector<8x32xf32>
    %163 = math.tanh %162 : vector<8x32xf32>
    %164 = arith.mulf %158, %163 : vector<8x32xf32>
    %cst_22 = arith.constant 0.000000e+00 : f32
    %165 = vector.broadcast %cst_22 : f32 to vector<8x32xf32>
    %166 = arith.maximumf %164, %165 : vector<8x32xf32>
    %167 = arith.truncf %166 : vector<8x32xf32> to vector<8x32xbf16>
    %c0_23 = arith.constant 0 : index
    %c0_24 = arith.constant 0 : index
    %168 = vector.load %arg4[%c0_23, %c0_24] : memref<32x128xbf16, #tpu.memory_space<vmem>>, vector<32x128xbf16>
    %cst_25 = arith.constant dense<0.000000e+00> : vector<8x128xf32>
    %169 = tpu.matmul %167, %168, %cst_25 {dimension_numbers = #tpu.dot_dimension_numbers<[1], [0], [0], [1], [0, 0, 1, 1], [], []>} : vector<8x32xbf16>, vector<32x128xbf16>, vector<8x128xf32> -> vector<8x128xf32>
    %c0_26 = arith.constant 0 : index
    %c0_27 = arith.constant 0 : index
    %170 = vector.load %arg5[%c0_26, %c0_27] : memref<1x128xf32, #tpu.memory_space<vmem>>, vector<1x128xf32>
    %171 = vector.broadcast %170 : vector<1x128xf32> to vector<8x128xf32>
    %172 = arith.addf %169, %171 : vector<8x128xf32>
    %c0_28 = arith.constant 0 : index
    %c0_29 = arith.constant 0 : index
    %173 = vector.load %arg6[%c0_28, %c0_29] : memref<8x128xf32, #tpu.memory_space<vmem>>, vector<8x128xf32>
    tpu.vector_store %arg6[%c0_28, %c0_29], %172 {strides = array<i32>} : memref<8x128xf32, #tpu.memory_space<vmem>>, vector<8x128xf32>,
    return
  }
}

</mosaic_0001>

<bundles_post_ra>
// kernel: simple_rnn_forward.1
= control target key start
LH: loop header
LB: loop body
LE: loop exit
PB: predicated region body
PF: predicated region fallthrough
CT: control target
= control target key end

     0   :  { %vm48_vm0 = vcmask 130048   ;;  %v558_v6 = vmov 0   ;;  %v94_v9 = vlaneseq  ;;  %v559_v14 = vmov 1.0   ;;  %s720_s1 = inlined_call_operand.vmem [shape: bf16[16,128], index: 1, kind: input, shape index: {}]   ;;  %s721_s2 = inlined_call_operand.vmem [shape: bf16[32,128], index: 2, kind: input, shape index: {}]   ;;  %s722_s0 = inlined_call_operand.vmem [shape: f32[64,16], index: 0, kind: input, shape index: {}]   ;;  %s723_s3 = inlined_call_operand.vmem [shape: f32[1,128], index: 3, kind: input, shape index: {}]   ;;  %s724_s4 = inlined_call_operand.vmem [shape: bf16[32,128], index: 4, kind: input, shape index: {}]   ;;  %s725_s5 = inlined_call_operand.vmem [shape: f32[1,128], index: 5, kind: input, shape index: {}]   ;;  %s726_s6 = inlined_call_operand.vmem [shape: f32[8,128], index: 6, kind: output, shape index: {}]  }
   0x1   :  { %v514_v0 = vld [vmem:[%s720_s1] sm:$0xff]  ;;  %v516_v1 = vld [vmem:[%s721_s2 + $0x8] sm:$0xff]  ;;  %v560_v18 = vmov 0.0   ;;  %vm111_vm2 = vcmask 261120   ;;  %v26_v46 = vld [vmem:[%s722_s0 + $0x10] sm:$0xff] }
   0x2   :  { %v24_v2 = vld [vmem:[%s722_s0] sm:$0xff]  ;;  %v25_v3 = vld [vmem:[%s722_s0 + $0x8] sm:$0xff]  ;;  %68 = vmatpush.bf16.msra.mxu0 %v514_v0  ;;  %121 = vmatpush.bf16.msra.mxu1 %v516_v1  ;;  %v95_v11 = vand.u32 127, %v94_v9  ;;  %v27_v47 = vld [vmem:[%s722_s0 + $0x18] sm:$0xff] }
   0x3   :  { %v32_v4 = vpack.c.bf16 %v25_v3, %v24_v2  ;;  %v515_v5 = vld [vmem:[%s721_s2] sm:$0xff]  ;;  %162 = vmatpush.bf16.msra.mxu2 %v516_v1  ;;  %203 = vmatpush.bf16.msra.mxu3 %v516_v1  ;;  %s561_s2 = smov 32   ;;  %v33_v48 = vpack.c.bf16 %v27_v47, %v26_v46 }
   0x4   :  { %v617_v7 = vld [vmem:[%s723_s3] ss:$0 sm:$0xff]  ;;  %vm96_vm1 = vcmp.lt.s32.totalorder %v95_v11, 96  ;;  %s562_s3 = smov 64  }
   0x5   :  { %486 = vmatmul.msk.bf16.vlgmr.msra.gmra.mxu0 %vm48_vm0, %v32_v4  ;;  %v620_v15 = vsel %vm96_vm1, 0.5, %v559_v14  ;;  %v622_v19 = vsel %vm96_vm1, 0.5, %v560_v18 }
   0x6   :  { %122 = vmatpush.bf16.msra.mxu1 %v515_v5 }
   0x7   :  { %163 = vmatpush.bf16.msra.mxu2 %v515_v5  ;;  %204 = vmatpush.bf16.msra.mxu3 %v515_v5 }
   0x9   :  { %123 = vmatmul.bf16.vlgmr.msra.gmra.mxu1 %v558_v6 }
   0xa   :  { %244 = vmatpush.bf16.msrb.mxu1 %v516_v1 }
   0xb   :  { %285 = vmatpush.bf16.msrb.mxu2 %v516_v1  ;;  %326 = vmatpush.bf16.msrb.mxu3 %v516_v1 }
   0xe   :  { %245 = vmatpush.bf16.msrb.mxu1 %v515_v5 }
   0xf   :  { %286 = vmatpush.bf16.msrb.mxu2 %v515_v5  ;;  %327 = vmatpush.bf16.msrb.mxu3 %v515_v5 }
  0x12   :  { %367 = vmatpush.bf16.msra.mxu1 %v516_v1 }
  0x15   :  { %487 = vmatmul.msk.bf16.gmra.mxu0 %vm48_vm0, %v33_v48 }
  0x16   :  { %368 = vmatpush.bf16.msra.mxu1 %v515_v5 }
  0x82   :  { %v70_v8 = vpop.f32.mrf.mxu0 }
  0x83   :  { %v71_v10 = vadd.f32 %v617_v7, %v70_v8 }
  0x86   :  { %v124_v12 = vpop.f32.mrf.mxu1 }
  0x87   :  { %v128_v13 = vadd.f32 %v124_v12, %v71_v10 }
  0x89   :  { %526 = vtanh.f32 %v128_v13 }
  0x8a   :  { %v72_v32 = vpop.f32.mrf.mxu0 }
  0x8b   :  { %v73_v33 = vadd.f32 %v617_v7, %v72_v32 }
  0x8e   :  { %v126_v16 = vpop.f32.mrf.mxu1 }
  0x8f   :  { %v527_v17 = vpop.eup %526 }
  0x90   :  { %v130_v20 = vmul.f32 %v527_v17, %v620_v15 }
  0x92   :  { %v131_v21 = vadd.f32 %v130_v20, %v622_v19  ;;  %v75_v53 = vpop.f32.mrf.mxu0 }
  0x93   :  { %v76_v54 = vadd.f32 %v617_v7, %v75_v53 }
  0x94   :  { %134 = vrot.lane.b32.xlu0 %v131_v21, %s561_s2  ;;  %v132_v24 = vmul.f32 0.0, %v131_v21 }
  0x9a   :  { %v77_v8 = vpop.f32.mrf.mxu0 }
  0x9b   :  { %v78_v9 = vadd.f32 %v617_v7, %v77_v8 }
 0x106   :  { %v135_v22 = vpop.permute.xlu0 %134 }
 0x107   :  { %v137_v23 = vmul.f32 %v135_v22, %v131_v21 }
 0x109   :  { %139 = vrot.lane.b32.xlu0 %v137_v23, %s561_s2 }
 0x17b   :  { %v140_v25 = vpop.permute.xlu0 %139 }
 0x17c   :  { %v142_v26 = vadd.f32 %v140_v25, %v132_v24  ;;  %v28_v24 = vld [vmem:[%s722_s0 + $0x20] sm:$0xff]  ;;  %v29_v25 = vld [vmem:[%s722_s0 + $0x28] sm:$0xff] }
 0x17e   :  { %528 = vtanh.f32 %v142_v26 }
 0x184   :  { %v529_v27 = vpop.eup %528 }
 0x185   :  { %145 = vrot.lane.b32.xlu1 %v529_v27, %s561_s2 }
 0x1f7   :  { %v146_v28 = vpop.permute.xlu1 %145 }
 0x1f8   :  { %v148_v29 = vmul.f32 %v146_v28, %v131_v21 }
 0x1fa   :  { %v149_v30 = vpack.c.bf16 %v148_v29, %v148_v29 }
 0x1fc   :  { %151 = vrot.lane.b32.xlu1 %v149_v30, %s562_s3 }
 0x26e   :  { %v152_v31 = vpop.permute.xlu1 %151 }
 0x26f   :  { %498 = vmatmul.msk.bf16.vlgmr.msra.gmra.mxu2 %vm111_vm2, %v152_v31 }
 0x270   :  { %408 = vmatpush.bf16.msra.mxu2 %v516_v1 }
 0x274   :  { %409 = vmatpush.bf16.msra.mxu2 %v515_v5 }
 0x2f2   :  { %v165_v34 = vpop.f32.mrf.mxu2 }
 0x2f3   :  { %v169_v35 = vadd.f32 %v165_v34, %v73_v33 }
 0x2f5   :  { %530 = vtanh.f32 %v169_v35 }
 0x2fa   :  { %v167_v36 = vpop.f32.mrf.mxu2 }
 0x2fb   :  { %v531_v37 = vpop.eup %530 }
 0x2fc   :  { %v171_v38 = vmul.f32 %v531_v37, %v620_v15 }
 0x2fe   :  { %v172_v39 = vadd.f32 %v171_v38, %v622_v19 }
 0x300   :  { %175 = vrot.lane.b32.xlu2 %v172_v39, %s561_s2  ;;  %v173_v42 = vmul.f32 %v172_v39, %v142_v26  ;;  %v34_v26 = vpack.c.bf16 %v29_v25, %v28_v24 }
 0x302   :  { %488 = vmatmul.msk.bf16.gmra.mxu0 %vm48_vm0, %v34_v26 }
 0x35a   :  { %v176_v40 = vpop.permute.xlu2 %175 }
 0x35b   :  { %v178_v41 = vmul.f32 %v176_v40, %v172_v39 }
 0x35d   :  { %180 = vrot.lane.b32.xlu2 %v178_v41, %s561_s2 }
 0x37f   :  { %v80_v31 = vpop.f32.mrf.mxu0 }
 0x380   :  { %v81_v32 = vadd.f32 %v617_v7, %v80_v31 }
 0x3b7   :  { %v181_v43 = vpop.permute.xlu2 %180 }
 0x3b8   :  { %v183_v44 = vadd.f32 %v181_v43, %v173_v42 }
 0x3ba   :  { %532 = vtanh.f32 %v183_v44 }
 0x3c0   :  { %v533_v45 = vpop.eup %532 }
 0x3c1   :  { %186 = vrot.lane.b32.xlu0 %v533_v45, %s561_s2 }
 0x433   :  { %v187_v49 = vpop.permute.xlu0 %186 }
 0x434   :  { %v189_v50 = vmul.f32 %v187_v49, %v172_v39  ;;  %v82_v49 = vpop.f32.mrf.mxu0 }
 0x436   :  { %v190_v51 = vpack.c.bf16 %v189_v50, %v189_v50  ;;  %v83_v50 = vadd.f32 %v617_v7, %v82_v49 }
 0x438   :  { %192 = vrot.lane.b32.xlu1 %v190_v51, %s562_s3 }
 0x4aa   :  { %v193_v52 = vpop.permute.xlu1 %192 }
 0x4ab   :  { %499 = vmatmul.msk.bf16.vlgmr.msra.gmra.mxu3 %vm111_vm2, %v193_v52 }
 0x52e   :  { %v206_v55 = vpop.f32.mrf.mxu3 }
 0x52f   :  { %v210_v56 = vadd.f32 %v206_v55, %v76_v54 }
 0x531   :  { %534 = vtanh.f32 %v210_v56 }
 0x536   :  { %v208_v57 = vpop.f32.mrf.mxu3 }
 0x537   :  { %v535_v58 = vpop.eup %534 }
 0x538   :  { %v212_v59 = vmul.f32 %v535_v58, %v620_v15 }
 0x53a   :  { %v213_v60 = vadd.f32 %v212_v59, %v622_v19 }
 0x53c   :  { %216 = vrot.lane.b32.xlu2 %v213_v60, %s561_s2  ;;  %v214_v63 = vmul.f32 %v213_v60, %v183_v44 }
 0x596   :  { %v217_v61 = vpop.permute.xlu2 %216 }
 0x597   :  { %v219_v62 = vmul.f32 %v217_v61, %v213_v60 }
 0x599   :  { %221 = vrot.lane.b32.xlu0 %v219_v62, %s561_s2 }
 0x60b   :  { %v222_v0 = vpop.permute.xlu0 %221 }
 0x60c   :  { %v224_v1 = vadd.f32 %v222_v0, %v214_v63  ;;  %v30_v63 = vld [vmem:[%s722_s0 + $0x30] sm:$0xff]  ;;  %v31_v0 = vld [vmem:[%s722_s0 + $0x38] sm:$0xff] }
 0x60e   :  { %536 = vtanh.f32 %v224_v1 }
 0x614   :  { %v537_v2 = vpop.eup %536 }
 0x615   :  { %227 = vrot.lane.b32.xlu1 %v537_v2, %s561_s2 }
 0x687   :  { %v228_v3 = vpop.permute.xlu1 %227 }
 0x688   :  { %v230_v4 = vmul.f32 %v228_v3, %v213_v60 }
 0x68a   :  { %v231_v5 = vpack.c.bf16 %v230_v4, %v230_v4 }
 0x68c   :  { %233 = vrot.lane.b32.xlu2 %v231_v5, %s562_s3 }
 0x6e6   :  { %v234_v6 = vpop.permute.xlu2 %233 }
 0x6e7   :  { %500 = vmatmul.msk.bf16.vlgmr.msrb.gmra.mxu1 %vm111_vm2, %v234_v6 }
 0x764   :  { %v247_v10 = vpop.f32.mrf.mxu1 }
 0x765   :  { %v251_v11 = vadd.f32 %v247_v10, %v78_v9 }
 0x767   :  { %538 = vtanh.f32 %v251_v11 }
 0x76c   :  { %v249_v12 = vpop.f32.mrf.mxu1 }
 0x76d   :  { %v539_v13 = vpop.eup %538 }
 0x76e   :  { %v253_v14 = vmul.f32 %v539_v13, %v620_v15 }
 0x770   :  { %v254_v16 = vadd.f32 %v253_v14, %v622_v19 }
 0x772   :  { %257 = vrot.lane.b32.xlu0 %v254_v16, %s561_s2  ;;  %v255_v20 = vmul.f32 %v254_v16, %v224_v1  ;;  %v35_v1 = vpack.c.bf16 %v31_v0, %v30_v63 }
 0x774   :  { %489 = vmatmul.msk.bf16.gmra.mxu0 %vm48_vm0, %v35_v1 }
 0x7e4   :  { %v258_v17 = vpop.permute.xlu0 %257 }
 0x7e5   :  { %v260_v18 = vmul.f32 %v258_v17, %v254_v16 }
 0x7e7   :  { %262 = vrot.lane.b32.xlu1 %v260_v18, %s561_s2 }
 0x7f1   :  { %v85_v6 = vpop.f32.mrf.mxu0 }
 0x7f2   :  { %v86_v8 = vadd.f32 %v617_v7, %v85_v6 }
 0x859   :  { %v263_v21 = vpop.permute.xlu1 %262 }
 0x85a   :  { %v265_v22 = vadd.f32 %v263_v21, %v255_v20 }
 0x85c   :  { %540 = vtanh.f32 %v265_v22 }
 0x862   :  { %v541_v23 = vpop.eup %540 }
 0x863   :  { %268 = vrot.lane.b32.xlu2 %v541_v23, %s561_s2 }
 0x8bd   :  { %v269_v27 = vpop.permute.xlu2 %268 }
 0x8be   :  { %v271_v28 = vmul.f32 %v269_v27, %v254_v16  ;;  %v87_v27 = vpop.f32.mrf.mxu0 }
 0x8c0   :  { %v272_v29 = vpack.c.bf16 %v271_v28, %v271_v28  ;;  %v88_v28 = vadd.f32 %v617_v7, %v87_v27 }
 0x8c2   :  { %274 = vrot.lane.b32.xlu0 %v272_v29, %s562_s3 }
 0x934   :  { %v275_v30 = vpop.permute.xlu0 %274 }
 0x935   :  { %501 = vmatmul.msk.bf16.vlgmr.msrb.gmra.mxu2 %vm111_vm2, %v275_v30 }
 0x9b8   :  { %v288_v33 = vpop.f32.mrf.mxu2 }
 0x9b9   :  { %v292_v34 = vadd.f32 %v288_v33, %v81_v32 }
 0x9bb   :  { %542 = vtanh.f32 %v292_v34 }
 0x9c0   :  { %v290_v35 = vpop.f32.mrf.mxu2 }
 0x9c1   :  { %v543_v36 = vpop.eup %542 }
 0x9c2   :  { %v294_v37 = vmul.f32 %v543_v36, %v620_v15 }
 0x9c4   :  { %v295_v38 = vadd.f32 %v294_v37, %v622_v19 }
 0x9c6   :  { %298 = vrot.lane.b32.xlu1 %v295_v38, %s561_s2  ;;  %v296_v41 = vmul.f32 %v295_v38, %v265_v22 }
 0xa38   :  { %v299_v39 = vpop.permute.xlu1 %298 }
 0xa39   :  { %v301_v40 = vmul.f32 %v299_v39, %v295_v38 }
 0xa3b   :  { %303 = vrot.lane.b32.xlu2 %v301_v40, %s561_s2  ;;  %v518_v40 = vld [vmem:[%s724_s4 + $0x8] sm:$0xff] }
 0xa3c   :  { %470 = vmatpush.bf16.msra.mxu3 %v518_v40 }
 0xa95   :  { %v304_v42 = vpop.permute.xlu2 %303 }
 0xa96   :  { %v306_v43 = vadd.f32 %v304_v42, %v296_v41 }
 0xa98   :  { %544 = vtanh.f32 %v306_v43 }
 0xa9e   :  { %v545_v44 = vpop.eup %544 }
 0xa9f   :  { %309 = vrot.lane.b32.xlu0 %v545_v44, %s561_s2 }
 0xb11   :  { %v310_v45 = vpop.permute.xlu0 %309 }
 0xb12   :  { %v312_v46 = vmul.f32 %v310_v45, %v295_v38  ;;  %v525_v45 = vld [vmem:[%s725_s5] ss:$0 sm:$0xff] }
 0xb14   :  { %v313_v47 = vpack.c.bf16 %v312_v46, %v312_v46 }
 0xb16   :  { %315 = vrot.lane.b32.xlu1 %v313_v47, %s562_s3 }
 0xb88   :  { %v316_v48 = vpop.permute.xlu1 %315 }
 0xb89   :  { %502 = vmatmul.msk.bf16.vlgmr.msrb.gmra.mxu3 %vm111_vm2, %v316_v48 }
 0xc0c   :  { %v329_v51 = vpop.f32.mrf.mxu3 }
 0xc0d   :  { %v333_v52 = vadd.f32 %v329_v51, %v83_v50 }
 0xc0f   :  { %546 = vtanh.f32 %v333_v52 }
 0xc14   :  { %v331_v53 = vpop.f32.mrf.mxu3 }
 0xc15   :  { %v547_v54 = vpop.eup %546 }
 0xc16   :  { %v335_v55 = vmul.f32 %v547_v54, %v620_v15 }
 0xc18   :  { %v336_v56 = vadd.f32 %v335_v55, %v622_v19 }
 0xc1a   :  { %339 = vrot.lane.b32.xlu2 %v336_v56, %s561_s2  ;;  %v337_v59 = vmul.f32 %v336_v56, %v306_v43 }
 0xc74   :  { %v340_v57 = vpop.permute.xlu2 %339 }
 0xc75   :  { %v342_v58 = vmul.f32 %v340_v57, %v336_v56 }
 0xc77   :  { %344 = vrot.lane.b32.xlu0 %v342_v58, %s561_s2 }
 0xce9   :  { %v345_v60 = vpop.permute.xlu0 %344 }
 0xcea   :  { %v347_v61 = vadd.f32 %v345_v60, %v337_v59 }
 0xcec   :  { %548 = vtanh.f32 %v347_v61 }
 0xcf2   :  { %v549_v62 = vpop.eup %548 }
 0xcf3   :  { %350 = vrot.lane.b32.xlu1 %v549_v62, %s561_s2 }
 0xd65   :  { %v351_v2 = vpop.permute.xlu1 %350 }
 0xd66   :  { %v353_v3 = vmul.f32 %v351_v2, %v336_v56 }
 0xd68   :  { %v354_v4 = vpack.c.bf16 %v353_v3, %v353_v3 }
 0xd6a   :  { %356 = vrot.lane.b32.xlu2 %v354_v4, %s562_s3 }
 0xdc4   :  { %v357_v5 = vpop.permute.xlu2 %356 }
 0xdc5   :  { %503 = vmatmul.msk.bf16.vlgmr.msra.gmra.mxu1 %vm111_vm2, %v357_v5 }
 0xe42   :  { %v370_v9 = vpop.f32.mrf.mxu1 }
 0xe43   :  { %v374_v10 = vadd.f32 %v370_v9, %v86_v8 }
 0xe45   :  { %550 = vtanh.f32 %v374_v10 }
 0xe4a   :  { %v372_v11 = vpop.f32.mrf.mxu1 }
 0xe4b   :  { %v551_v12 = vpop.eup %550 }
 0xe4c   :  { %v376_v13 = vmul.f32 %v551_v12, %v620_v15 }
 0xe4e   :  { %v377_v14 = vadd.f32 %v376_v13, %v622_v19 }
 0xe50   :  { %380 = vrot.lane.b32.xlu0 %v377_v14, %s561_s2  ;;  %v378_v18 = vmul.f32 %v377_v14, %v347_v61 }
 0xec2   :  { %v381_v16 = vpop.permute.xlu0 %380 }
 0xec3   :  { %v383_v17 = vmul.f32 %v381_v16, %v377_v14 }
 0xec5   :  { %385 = vrot.lane.b32.xlu1 %v383_v17, %s561_s2 }
 0xf37   :  { %v386_v20 = vpop.permute.xlu1 %385 }
 0xf38   :  { %v388_v21 = vadd.f32 %v386_v20, %v378_v18 }
 0xf3a   :  { %552 = vtanh.f32 %v388_v21 }
 0xf40   :  { %v553_v22 = vpop.eup %552 }
 0xf41   :  { %391 = vrot.lane.b32.xlu2 %v553_v22, %s561_s2 }
 0xf9b   :  { %v392_v23 = vpop.permute.xlu2 %391 }
 0xf9c   :  { %v394_v24 = vmul.f32 %v392_v23, %v377_v14 }
 0xf9e   :  { %v395_v25 = vpack.c.bf16 %v394_v24, %v394_v24 }
 0xfa0   :  { %397 = vrot.lane.b32.xlu0 %v395_v25, %s562_s3 }
0x1012   :  { %v398_v26 = vpop.permute.xlu0 %397 }
0x1013   :  { %504 = vmatmul.msk.bf16.vlgmr.msra.gmra.mxu2 %vm111_vm2, %v398_v26 }
0x1096   :  { %v411_v29 = vpop.f32.mrf.mxu2 }
0x1097   :  { %v415_v30 = vadd.f32 %v411_v29, %v88_v28 }
0x1099   :  { %554 = vtanh.f32 %v415_v30 }
0x109e   :  { %v413_v31 = vpop.f32.mrf.mxu2 }
0x109f   :  { %v555_v32 = vpop.eup %554 }
0x10a0   :  { %v417_v33 = vmul.f32 %v555_v32, %v620_v15  ;;  %v517_v15 = vld [vmem:[%s724_s4] sm:$0xff] }
0x10a1   :  { %471 = vmatpush.bf16.msra.mxu3 %v517_v15 }
0x10a2   :  { %v418_v34 = vadd.f32 %v417_v33, %v622_v19 }
0x10a4   :  { %421 = vrot.lane.b32.xlu1 %v418_v34, %s561_s2  ;;  %v419_v37 = vmul.f32 %v418_v34, %v388_v21 }
0x1116   :  { %v422_v35 = vpop.permute.xlu1 %421 }
0x1117   :  { %v424_v36 = vmul.f32 %v422_v35, %v418_v34 }
0x1119   :  { %426 = vrot.lane.b32.xlu2 %v424_v36, %s561_s2 }
0x1173   :  { %v427_v38 = vpop.permute.xlu2 %426 }
0x1174   :  { %v429_v39 = vadd.f32 %v427_v38, %v419_v37 }
0x1176   :  { %556 = vtanh.f32 %v429_v39 }
0x117c   :  { %v557_v7 = vpop.eup %556 }
0x117d   :  { %432 = vrot.lane.b32.xlu0 %v557_v7, %s561_s2 }
0x11ef   :  { %v433_v19 = vpop.permute.xlu0 %432 }
0x11f0   :  { %v435_v41 = vmul.f32 %v433_v19, %v418_v34 }
0x11f2   :  { %v436_v42 = vmax.f32 %v435_v41, 0.0 }
0x11f4   :  { %v437_v43 = vpack.c.bf16 %v436_v42, %v436_v42 }
0x11f6   :  { %447 = vrot.lane.b32.xlu1 %v437_v43, %s562_s3 }
0x1268   :  { %v448_v44 = vpop.permute.xlu1 %447 }
0x1269   :  { %513 = vmatmul.msk.bf16.vlgmr.msra.gmra.mxu3 %vm111_vm2, %v448_v44 }
0x12ec   :  { %v473_v46 = vpop.f32.mrf.mxu3 }
0x12ed   :  { %v474_v47 = vadd.f32 %v525_v45, %v473_v46 }
0x12ef   :  { %477 = vst [vmem:[%s726_s6] sm:$0xff] %v474_v47 }
0x12f4   :  { %v475_v48 = vpop.f32.mrf.mxu3 }

</bundles_post_ra>
